<compile_context>
chip_gen: v6e
topology: v6e:2x2x1
jax: 0.10.0
libtpu: 0.0.40
codegen_flags: <defaults>
</compile_context>

<pallas_src>
import jax
import jax.numpy as jnp
from jax.experimental import pallas as pl
from jax.experimental.pallas import tpu as pltpu


# ----------------------------------------------------------------------------
# Kernel bodies.
# ----------------------------------------------------------------------------
def _concat_single_store_kernel(state_ref, action_ref, out_ref):
    # v5e path: build the concatenated tile in-register and issue ONE
    # full-width store (only 1 vst slot per bundle on v5e).
    out_ref[...] = jnp.concatenate([state_ref[...], action_ref[...]], axis=-1)


def _make_two_store_kernel(s_width):
    # v6e / v7x path: two static-slice stores.  The second masked store rides
    # the extra store slot, and the in-register concat's XLU/VPU work goes away.
    def kernel(state_ref, action_ref, out_ref):
        out_ref[:, :s_width] = state_ref[...]
        out_ref[:, s_width:] = action_ref[...]
    return kernel


def _is_v5_device():
    try:
        kind = jax.devices()[0].device_kind.lower()
        return "v5" in kind
    except Exception:
        return False


def _round_up(x, m):
    return ((x + m - 1) // m) * m


# ----------------------------------------------------------------------------
# Wrapper.
# ----------------------------------------------------------------------------
def lstm_critic_forward(state, action, *, batch_tile=1024, tiny_batch_max=512):
    """Pallas implementation of LSTMCritic.forward (torch.cat(..., dim=1))."""
    assert state.ndim == 2 and action.ndim == 2
    assert state.shape[0] == action.shape[0], "batch dims must match"
    assert state.dtype == action.dtype, (
        "state/action dtype mismatch; torch.cat keeps a common dtype and we "
        "refuse silent promotion + downcast")

    B, S = state.shape
    _, A = action.shape
    dtype = state.dtype
    itemsize = jnp.dtype(dtype).itemsize
    out_shape = jax.ShapeDtypeStruct((B, S + A), dtype)

    # Memory-only op: read B*(S+A) elements, write B*(S+A) elements.
    cost = pl.CostEstimate(
        flops=0, transcendentals=0,
        bytes_accessed=2 * B * (S + A) * itemsize)

    kernel = (_concat_single_store_kernel if _is_v5_device()
              else _make_two_store_kernel(S))

    # --- tiny-batch path: whole-array blocks, no grid -----------------------
    # Block shapes equal the full array dims (legal regardless of (8,128)),
    # and any tiling at these sizes is pure per-step overhead.
    if B <= tiny_batch_max:
        return pl.pallas_call(
            kernel,
            out_shape=out_shape,
            in_specs=[
                pl.BlockSpec((B, S), lambda: (0, 0)),
                pl.BlockSpec((B, A), lambda: (0, 0)),
            ],
            out_specs=pl.BlockSpec((B, S + A), lambda: (0, 0)),
            cost_estimate=cost,
        )(state, action)

    # --- large-batch path: always gridded over the batch axis ---------------
    # Tile: big (default 1024 rows) but clamped so the grid has >= 2 steps
    # (v7x megacore), and a multiple of 8 (sublane aligned).  cdiv handles the
    # ragged tail; Pallas masks the partial last block.
    tb = min(batch_tile, _round_up(pl.cdiv(B, 2), 8))
    tb = max(tb, 8)
    grid = (pl.cdiv(B, tb),)

    # VMEM budget: inputs (tb*(S+A)) + output (tb*(S+A)), double-buffered.
    block_bytes = tb * (S + A) * itemsize
    vmem_needed = 4 * block_bytes                       # 2 bufs x (in + out)
    vmem_limit = int(min(max(2 * vmem_needed, 1 << 20), 64 << 20))

    return pl.pallas_call(
        kernel,
        out_shape=out_shape,
        grid=grid,
        in_specs=[
            pl.BlockSpec((tb, S), lambda i: (i, 0)),
            pl.BlockSpec((tb, A), lambda i: (i, 0)),
        ],
        out_specs=pl.BlockSpec((tb, S + A), lambda i: (i, 0)),
        compiler_params=pltpu.CompilerParams(
            dimension_semantics=("parallel",),
            vmem_limit_bytes=vmem_limit),
        cost_estimate=cost,
    )(state, action)


# ----------------------------------------------------------------------------
# Deterministic parameter init matching nn.LSTM(state+action, hidden, layers).
# (Created in __init__ but unused by forward(), exactly as in PyTorch.)
# ----------------------------------------------------------------------------
def init_lstm_params(key, input_size, hidden_size, num_layers):
    params = {}
    k = 1.0 / jnp.sqrt(hidden_size)
    for layer in range(num_layers):
        in_sz = input_size if layer == 0 else hidden_size
        key, k1, k2, k3, k4 = jax.random.split(key, 5)
        params[f"weight_ih_l{layer}"] = jax.random.uniform(
            k1, (4 * hidden_size, in_sz), minval=-k, maxval=k, dtype=jnp.float32)
        params[f"weight_hh_l{layer}"] = jax.random.uniform(
            k2, (4 * hidden_size, hidden_size), minval=-k, maxval=k, dtype=jnp.float32)
        params[f"bias_ih_l{layer}"] = jax.random.uniform(
            k3, (4 * hidden_size,), minval=-k, maxval=k, dtype=jnp.float32)
        params[f"bias_hh_l{layer}"] = jax.random.uniform(
            k4, (4 * hidden_size,), minval=-k, maxval=k, dtype=jnp.float32)
    return params


if __name__ == "__main__":
    # Small shapes consistent with the module: state_size=24, action_size=8.
    batch = 2
    state_size = 24
    action_size = 8
    hidden_size = 32
    num_layers = 2

    key = jax.random.PRNGKey(0)
    k_state, k_action, k_params, k_big = jax.random.split(key, 4)

    state = jax.random.normal(k_state, (batch, state_size), dtype=jnp.float32)
    action = jax.random.normal(k_action, (batch, action_size), dtype=jnp.float32)

    # Parameters exist (as in __init__) but are not used by forward().
    _lstm_params = init_lstm_params(
        k_params, state_size + action_size, hidden_size, num_layers)

    # --- tiny-shape path (matches the module's forward exactly) ---
    out = lstm_critic_forward(state, action)
    out = jax.block_until_ready(out)
    ref = jnp.concatenate([state, action], axis=1)
    assert out.shape == (batch, state_size + action_size)
    assert jnp.allclose(out, ref), "Pallas concat mismatch vs reference (small)"

    # --- batch-tiled path: gridded, >= 2 steps, ragged last block ---
    big_b = 2050   # not a multiple of the tile -> exercises cdiv + masked tail
    kb_s, kb_a = jax.random.split(k_big)
    big_state = jax.random.normal(kb_s, (big_b, state_size), dtype=jnp.float32)
    big_action = jax.random.normal(kb_a, (big_b, action_size), dtype=jnp.float32)
    big_out = jax.block_until_ready(lstm_critic_forward(big_state, big_action))
    big_ref = jnp.concatenate([big_state, big_action], axis=1)
    assert big_out.shape == (big_b, state_size + action_size)
    assert jnp.allclose(big_out, big_ref), "Pallas concat mismatch vs reference (tiled)"

    print("KERNEL_OK")
</pallas_src>

<mosaic_0001>
module attributes {stable_mosaic.version = 11 : i64} {
  func.func @kernel(%arg0: memref<2x24xf32, #tpu.memory_space<vmem>>, %arg1: memref<2x8xf32, #tpu.memory_space<vmem>>, %arg2: memref<2x32xf32, #tpu.memory_space<vmem>>) attributes {dimension_semantics = [], scalar_prefetch = 0 : i64, scratch_operands = 0 : i64, tpu.core_type = #tpu.core_type<tc>} {
    %c0 = arith.constant 0 : index
    %c0_0 = arith.constant 0 : index
    %0 = vector.load %arg0[%c0, %c0_0] : memref<2x24xf32, #tpu.memory_space<vmem>>, vector<2x24xf32>
    %c0_1 = arith.constant 0 : index
    %c0_2 = arith.constant 0 : index
    %1 = vector.load %arg2[%c0_1, %c0_2] : memref<2x32xf32, #tpu.memory_space<vmem>>, vector<2x24xf32>
    tpu.vector_store %arg2[%c0_1, %c0_2], %0 {strides = array<i32>} : memref<2x32xf32, #tpu.memory_space<vmem>>, vector<2x24xf32>,
    %c0_3 = arith.constant 0 : index
    %c0_4 = arith.constant 0 : index
    %2 = vector.load %arg1[%c0_3, %c0_4] : memref<2x8xf32, #tpu.memory_space<vmem>>, vector<2x8xf32>
    %c0_5 = arith.constant 0 : index
    %c24 = arith.constant 24 : index
    %3 = vector.load %arg2[%c0_5, %c24] : memref<2x32xf32, #tpu.memory_space<vmem>>, vector<2x8xf32>
    tpu.vector_store %arg2[%c0_5, %c24], %2 {strides = array<i32>} : memref<2x32xf32, #tpu.memory_space<vmem>>, vector<2x8xf32>,
    return
  }
}

</mosaic_0001>

<bundles_post_ra>
// kernel: tpu_custom_call.1
= control target key start
LH: loop header
LB: loop body
LE: loop exit
PB: predicated region body
PF: predicated region fallthrough
CT: control target
= control target key end

     0   :  { %7 = vsyncpa [#allocation3], 0  ;;  %s160_s0 = inlined_call_operand.hbm [shape: f32[2,24], index: 0, kind: input, shape index: {}]   ;;  %s161_s1 = inlined_call_operand.hbm [shape: f32[2,8], index: 1, kind: input, shape index: {}]   ;;  %s162_s2 = inlined_call_operand.hbm [shape: f32[2,32], index: 2, kind: output, shape index: {}]  }
   0x1   :  { %8 = vsyncpa [#allocation6], 0 }
   0x2   :  { %9 = vsyncpa [#allocation4], 0  ;;  %s132_s9 = smov [#allocation2]   ;;  %s133_s11 = smov [#allocation5]  }
   0x3   :  { %s16_s10 = sshll.u32 %s132_s9, 4  ;;  %s26_s12 = sshll.u32 %s133_s11, 4  ;;  %s17_s10 = int_to_ptr.vmem [resolvable:$true] %s16_s10  ;;  %s27_s12 = int_to_ptr.vmem [resolvable:$true] %s26_s12 }
   0x4   :  { %s74_s13 = scalar_lea.vmem %s17_s10, 32  ;;  %p79_p1 = scmp.lt.s32.totalorder %s17_s10, %s17_s10 }
   0x5   :  { %p75_p0 = scmp.ne.s32.totalorder %s17_s10, %s74_s13  ;;  %p80_p2 = scmp.lt.s32.totalorder %s74_s13, %s74_s13 }
   0x7   :  { %p81_p3 = por %p80_p2, %p79_p1 }
   0x9   :  { %p82_p4 = pnand %p81_p3, %p75_p0 }
   0xb   :  { %85 = shalt.err (!%p82_p4)
}
   0xc   :  { %19 = dma.hbm_to_vmem [thread:$0]  %s160_s0, 32, %s17_s10, [#allocation3]  }
   0xd   :  { %s94_s16 = scalar_lea.vmem %s27_s12, 32  ;;  %p99_p6 = scmp.lt.s32.totalorder %s27_s12, %s27_s12 }
   0xe   :  { %p95_p5 = scmp.ne.s32.totalorder %s27_s12, %s94_s16  ;;  %p100_p7 = scmp.lt.s32.totalorder %s94_s16, %s94_s16 }
  0x10   :  { %p101_p8 = por %p100_p7, %p99_p6 }
  0x12   :  { %p102_p9 = pnand %p101_p8, %p95_p5 }
  0x14   :  { %105 = shalt.err (!%p102_p9)
}
  0x15   :  { %29 = dma.hbm_to_vmem [thread:$0]  %s161_s1, 32, %s27_s12, [#allocation6]  }
  0x16   :  { %126 = dma.done.wait [#allocation3], 32  }
  0x17   :  { %127 = vsyncadd [#allocation3], 4294967264 }
  0x18   :  { %128 = dma.done.wait [#allocation6], 32  }
  0x19   :  { %129 = vsyncadd [#allocation6], 4294967264  ;;  %vm37_vm0 = vcmask 189440   ;;  %v39_v0 = vld [vmem:[#allocation5] sm:$0x3]  ;;  %s134_s19 = smov 24  }
  0x1a   :  { %v36_v1 = vld [vmem:[#allocation2] sm:$0x3]  ;;  %41 = vrot.lane.b32.xlu0 %v39_v0, %s134_s19  ;;  %s135_s0 = smov [#allocation7]   ;;  %vm44_vm1 = vcmask 255168  }
  0x1b   :  { %38 = vst.msk [vmem:[#allocation7] sm:$0x3] %vm37_vm0, %v36_v1  ;;  %s52_s20 = sshll.u32 %s135_s0, 4  ;;  %s53_s20 = int_to_ptr.vmem [resolvable:$true] %s52_s20 }
  0x1c   :  { %s106_s21 = scalar_lea.vmem %s53_s20, 32  ;;  %p111_p11 = scmp.lt.s32.totalorder %s53_s20, %s53_s20 }
  0x1d   :  { %p107_p10 = scmp.ne.s32.totalorder %s53_s20, %s106_s21  ;;  %p112_p12 = scmp.lt.s32.totalorder %s106_s21, %s106_s21 }
  0x1f   :  { %p113_p13 = por %p112_p12, %p111_p11 }
  0x21   :  { %p114_p0 = pnand %p113_p13, %p107_p10 }
  0x8c   :  { %v42_v2 = vpop.permute.xlu0 %41 }
  0x8d   :  { %45 = vst.msk [vmem:[#allocation7] sm:$0x3] %vm44_vm1, %v42_v2 }
  0x8e   :  { %117 = shalt.err (!%p114_p0)
}
  0x8f   :  { %55 = dma.vmem_to_hbm [thread:$0]  %s53_s20, 32, %s162_s2, [#allocation4]  }
  0x90   :  { %130 = dma.done.wait [#allocation4], 32  }
  0x91   :  { %131 = vsyncadd [#allocation4], 4294967264 }
  0x92   :  { %59 = vsyncpa [#allocation3], 1 }
  0x93   :  { %60 = vsyncpa [#allocation6], 1 }
  0x94   :  { %61 = vsyncpa [#allocation4], 1 }

</bundles_post_ra>
